<compile_context>
chip_gen: v7x
topology: tpu7x:2x2x1
jax: 0.10.0
libtpu: 0.0.40
codegen_flags: <defaults>
</compile_context>

<pallas_src>
import jax
import jax.numpy as jnp
from jax.experimental import pallas as pl
from jax.experimental.pallas import tpu as pltpu

KERNEL_SIZE = 3
PADDING = 1
BN_EPS = 1e-5

_TAPS = [(dy, dx) for dy in range(KERNEL_SIZE) for dx in range(KERNEL_SIZE)]


def _out_hw(size, stride):
    return (size + 2 * PADDING - KERNEL_SIZE) // stride + 1


# ---------------- Kernel 1: per-sample BN batch statistics (sum, sumsq) ------------
def _stats_kernel(x_ref, o_ref):
    x = x_ref[...]                                          # (HW, C) f32
    o_ref[0:1, :] = jnp.sum(x, axis=0, keepdims=True)
    o_ref[1:2, :] = jnp.sum(x * x, axis=0, keepdims=True)


def bn_batch_stats(x3d):
    N, HW, C = x3d.shape
    return pl.pallas_call(
        _stats_kernel,
        out_shape=jax.ShapeDtypeStruct((N, 2, C), jnp.float32),
        grid=(N,),
        in_specs=[pl.BlockSpec((None, HW, C), lambda n: (n, 0, 0))],
        out_specs=pl.BlockSpec((None, 2, C), lambda n: (n, 0, 0)),
        compiler_params=pltpu.CompilerParams(dimension_semantics=("parallel",)),
    )(x3d)


def _finalize_bn(partial_stats, count, gamma, beta):
    """Per-sample (sum, sumsq) partials -> per-channel (scale, offset), tiny plain JAX."""
    tot = jnp.sum(partial_stats, axis=0)                    # (2, C)
    mean = tot[0] / count
    var = tot[1] / count - mean * mean                      # biased variance
    scale = gamma * jax.lax.rsqrt(var + BN_EPS)
    offset = beta - mean * scale
    return jnp.stack([scale, offset], axis=0).astype(jnp.float32)   # (2, C)


# -------- Kernel 2: bn1+relu (+zero-pad in VMEM) + 3x3 conv1 + fused shortcut ------
# -------- + bn2 partial stats epilogue, one sample per grid step -------------------
def _make_bn_conv1_kernel(H, W, Cin, Ho, Wo, stride, planes, has_proj):
    def kernel(*args):
        if has_proj:
            (x_ref, bn_ref, w_ref, wsc_ref,
             out_ref, sc_ref, st_ref, pad_ref) = args
        else:
            x_ref, bn_ref, w_ref, out_ref, st_ref, pad_ref = args

        # BN1 (precomputed scale/offset) + ReLU + zero-pad, entirely in VMEM.
        pad_ref[...] = jnp.zeros_like(pad_ref)
        scale = bn_ref[0:1, :]                              # (1, Cin) f32
        offset = bn_ref[1:2, :]
        pre = jnp.maximum(x_ref[...] * scale + offset, 0.0)
        pad_ref[1:H + 1, 1:W + 1, :] = pre.astype(pad_ref.dtype)

        def tap(dy, dx):
            if stride == 1:
                a = pad_ref[dy:dy + Ho, dx:dx + Wo, :]
            else:
                a = pad_ref[pl.ds(dy, Ho, stride), pl.ds(dx, Wo, stride), :]
            return a.reshape(Ho * Wo, Cin)

        # 3x3 conv = nine shifted-tap matmuls, f32 accumulation on the MXU.
        acc = jnp.zeros((Ho * Wo, planes), jnp.float32)
        for t, (dy, dx) in enumerate(_TAPS):
            acc += jnp.dot(tap(dy, dx), w_ref[t],
                           preferred_element_type=jnp.float32)

        # bn2 partial stats (per-sample sum / sum-of-squares over spatial) — free
        # epilogue so conv1 output is never re-read from HBM for statistics.
        st_ref[0:1, :] = jnp.sum(acc, axis=0, keepdims=True)
        st_ref[1:2, :] = jnp.sum(acc * acc, axis=0, keepdims=True)
        out_ref[...] = acc.reshape(Ho, Wo, planes).astype(out_ref.dtype)

        # Projection shortcut (1x1, stride) == matmul of the center tap.
        if has_proj:
            sc = jnp.dot(tap(1, 1), wsc_ref[...],
                         preferred_element_type=jnp.float32)
            sc_ref[...] = sc.reshape(Ho, Wo, planes).astype(sc_ref.dtype)

    return kernel


def fused_bn_conv1(x_nhwc, bn1, w_taps, w_sc, *, stride, planes, dtype):
    N, H, W, Cin = x_nhwc.shape
    Ho, Wo = _out_hw(H, stride), _out_hw(W, stride)
    has_proj = w_sc is not None

    in_specs = [pl.BlockSpec((None, H, W, Cin), lambda n: (n, 0, 0, 0)),
                pl.BlockSpec((2, Cin), lambda n: (0, 0)),
                pl.BlockSpec((9, Cin, planes), lambda n: (0, 0, 0))]
    inputs = [x_nhwc, bn1, w_taps]
    out_shapes = [jax.ShapeDtypeStruct((N, Ho, Wo, planes), dtype)]
    out_specs = [pl.BlockSpec((None, Ho, Wo, planes), lambda n: (n, 0, 0, 0))]
    if has_proj:
        in_specs.append(pl.BlockSpec((Cin, planes), lambda n: (0, 0)))
        inputs.append(w_sc)
        out_shapes.append(jax.ShapeDtypeStruct((N, Ho, Wo, planes), dtype))
        out_specs.append(pl.BlockSpec((None, Ho, Wo, planes), lambda n: (n, 0, 0, 0)))
    out_shapes.append(jax.ShapeDtypeStruct((N, 2, planes), jnp.float32))
    out_specs.append(pl.BlockSpec((None, 2, planes), lambda n: (n, 0, 0)))

    return pl.pallas_call(
        _make_bn_conv1_kernel(H, W, Cin, Ho, Wo, stride, planes, has_proj),
        out_shape=tuple(out_shapes),
        grid=(N,),
        in_specs=in_specs,
        out_specs=tuple(out_specs),
        scratch_shapes=[pltpu.VMEM((H + 2, W + 2, Cin), dtype)],
        compiler_params=pltpu.CompilerParams(dimension_semantics=("parallel",)),
    )(*inputs)


# -------- Kernel 3: bn2+relu (+pad) + 3x3 conv2 + SE gate + scale + residual -------
def _make_conv2_se_kernel(Ho, Wo, planes):
    def kernel(out1_ref, sc_ref, bn_ref, w_ref, fc1w_ref, fc1b_ref,
               fc2w_ref, fc2b_ref, o_ref, pad_ref):
        # BN2 + ReLU + zero-pad into VMEM scratch.
        pad_ref[...] = jnp.zeros_like(pad_ref)
        scale = bn_ref[0:1, :]
        offset = bn_ref[1:2, :]
        mid = jnp.maximum(out1_ref[...].astype(jnp.float32) * scale + offset, 0.0)
        pad_ref[1:Ho + 1, 1:Wo + 1, :] = mid.astype(pad_ref.dtype)

        # 3x3 conv2 (stride 1), f32 accumulation.
        acc = jnp.zeros((Ho * Wo, planes), jnp.float32)
        for t, (dy, dx) in enumerate(_TAPS):
            a = pad_ref[dy:dy + Ho, dx:dx + Wo, :].reshape(Ho * Wo, planes)
            acc += jnp.dot(a, w_ref[t], preferred_element_type=jnp.float32)

        # SE gate: global average pool -> fc1 -> relu -> fc2 -> sigmoid.
        pooled = jnp.mean(acc, axis=0, keepdims=True)               # (1, planes)
        h = jnp.maximum(jnp.dot(pooled, fc1w_ref[...],
                                preferred_element_type=jnp.float32)
                        + fc1b_ref[...], 0.0)                       # (1, planes//16)
        z = jnp.dot(h, fc2w_ref[...],
                    preferred_element_type=jnp.float32) + fc2b_ref[...]
        gate = 1.0 / (1.0 + jnp.exp(-z))                            # (1, planes)

        # Channel scale + residual add; only the final result goes back to HBM.
        out = acc.reshape(Ho, Wo, planes) * gate + sc_ref[...].astype(jnp.float32)
        o_ref[...] = out.astype(o_ref.dtype)

    return kernel


def fused_conv2_se(out1, shortcut, bn2, w_taps, fw1, fb1, fw2, fb2, *, dtype):
    N, Ho, Wo, planes = out1.shape
    c16 = fw1.shape[1]
    return pl.pallas_call(
        _make_conv2_se_kernel(Ho, Wo, planes),
        out_shape=jax.ShapeDtypeStruct((N, Ho, Wo, planes), jnp.float32),
        grid=(N,),
        in_specs=[pl.BlockSpec((None, Ho, Wo, planes), lambda n: (n, 0, 0, 0)),
                  pl.BlockSpec((None, Ho, Wo, planes), lambda n: (n, 0, 0, 0)),
                  pl.BlockSpec((2, planes), lambda n: (0, 0)),
                  pl.BlockSpec((9, planes, planes), lambda n: (0, 0, 0)),
                  pl.BlockSpec((planes, c16), lambda n: (0, 0)),
                  pl.BlockSpec((1, c16), lambda n: (0, 0)),
                  pl.BlockSpec((c16, planes), lambda n: (0, 0)),
                  pl.BlockSpec((1, planes), lambda n: (0, 0))],
        out_specs=pl.BlockSpec((None, Ho, Wo, planes), lambda n: (n, 0, 0, 0)),
        scratch_shapes=[pltpu.VMEM((Ho + 2, Wo + 2, planes), dtype)],
        compiler_params=pltpu.CompilerParams(dimension_semantics=("parallel",)),
    )(out1, shortcut, bn2, w_taps, fw1, fb1, fw2, fb2)


# ----------------------------------- forward --------------------------------------
def preact_block_forward(x_nchw, params, stride=1, compute_dtype=jnp.bfloat16):
    N, Cin, H, W = x_nchw.shape
    planes = params["conv1_w"].shape[0]
    c16 = params["fc1_w"].shape[0]
    Ho, Wo = _out_hw(H, stride), _out_hw(W, stride)
    has_proj = (stride != 1) or (Cin != planes)

    x_nhwc = jnp.transpose(x_nchw, (0, 2, 3, 1)).astype(jnp.float32)

    # bn1 batch statistics (Pallas per-sample partials, tiny plain-JAX finalize).
    st1 = bn_batch_stats(x_nhwc.reshape(N, H * W, Cin))
    bn1 = _finalize_bn(st1, N * H * W, params["bn1_gamma"], params["bn1_beta"])

    # conv weights as 9 taps of (Cin, Cout); MXU operands in compute_dtype.
    w1 = jnp.transpose(params["conv1_w"], (2, 3, 1, 0)) \
            .reshape(9, Cin, planes).astype(compute_dtype)
    w_sc = None
    if has_proj:
        w_sc = params["shortcut_w"].reshape(planes, Cin).T.astype(compute_dtype)

    outs = fused_bn_conv1(x_nhwc, bn1, w1, w_sc,
                          stride=stride, planes=planes, dtype=compute_dtype)
    if has_proj:
        out1, shortcut, st2 = outs
    else:
        out1, st2 = outs
        shortcut = x_nhwc                     # identity shortcut (same shape/stride)

    bn2 = _finalize_bn(st2, N * Ho * Wo, params["bn2_gamma"], params["bn2_beta"])

    w2 = jnp.transpose(params["conv2_w"], (2, 3, 1, 0)) \
            .reshape(9, planes, planes).astype(compute_dtype)
    fw1 = params["fc1_w"].reshape(c16, planes).T.astype(jnp.float32)   # (planes, c16)
    fb1 = params["fc1_b"].reshape(1, c16).astype(jnp.float32)
    fw2 = params["fc2_w"].reshape(planes, c16).T.astype(jnp.float32)   # (c16, planes)
    fb2 = params["fc2_b"].reshape(1, planes).astype(jnp.float32)

    out = fused_conv2_se(out1, shortcut, bn2, w2, fw1, fb1, fw2, fb2,
                         dtype=compute_dtype)
    return jnp.transpose(out, (0, 3, 1, 2))                            # back to NCHW


# ----------------------------- pure-JAX reference ----------------------------------
def reference_forward(x_nchw, params, stride=1):
    def bn_relu_ref(x, g, b):  # NHWC, training-mode batch stats
        mean = jnp.mean(x, axis=(0, 1, 2), keepdims=True)
        var = jnp.mean(jnp.square(x - mean), axis=(0, 1, 2), keepdims=True)
        return jnp.maximum((x - mean) * jax.lax.rsqrt(var + BN_EPS) * g + b, 0.0)

    def conv(x, w_oihw, s, pad):
        return jax.lax.conv_general_dilated(
            x, jnp.transpose(w_oihw, (2, 3, 1, 0)), (s, s),
            ((pad, pad), (pad, pad)), dimension_numbers=("NHWC", "HWIO", "NHWC"))

    N, Cin, H, W = x_nchw.shape
    planes = params["conv1_w"].shape[0]
    x = jnp.transpose(x_nchw, (0, 2, 3, 1))
    pre = bn_relu_ref(x, params["bn1_gamma"], params["bn1_beta"])
    sc = conv(pre, params["shortcut_w"], stride, 0) if (stride != 1 or Cin != planes) else x
    o = conv(pre, params["conv1_w"], stride, PADDING)
    o = conv(bn_relu_ref(o, params["bn2_gamma"], params["bn2_beta"]),
             params["conv2_w"], 1, PADDING)
    w = jnp.mean(o, axis=(1, 2), keepdims=True)
    c16 = params["fc1_w"].shape[0]
    w = jnp.maximum(jnp.einsum("nhwc,kc->nhwk", w,
                               params["fc1_w"].reshape(c16, planes)) + params["fc1_b"], 0.0)
    w = jax.nn.sigmoid(jnp.einsum("nhwk,ck->nhwc", w,
                                  params["fc2_w"].reshape(planes, c16)) + params["fc2_b"])
    return jnp.transpose(o * w + sc, (0, 3, 1, 2))


if __name__ == "__main__":
    key = jax.random.PRNGKey(0)
    N, in_planes, planes, H, W, stride = 2, 16, 32, 16, 16, 1
    ks = jax.random.split(key, 12)
    params = {
        "bn1_gamma": 1.0 + 0.1 * jax.random.normal(ks[0], (in_planes,), jnp.float32),
        "bn1_beta": 0.1 * jax.random.normal(ks[1], (in_planes,), jnp.float32),
        "conv1_w": 0.1 * jax.random.normal(ks[2], (planes, in_planes, 3, 3), jnp.float32),
        "bn2_gamma": 1.0 + 0.1 * jax.random.normal(ks[3], (planes,), jnp.float32),
        "bn2_beta": 0.1 * jax.random.normal(ks[4], (planes,), jnp.float32),
        "conv2_w": 0.1 * jax.random.normal(ks[5], (planes, planes, 3, 3), jnp.float32),
        "shortcut_w": 0.1 * jax.random.normal(ks[6], (planes, in_planes, 1, 1), jnp.float32),
        "fc1_w": 0.1 * jax.random.normal(ks[7], (planes // 16, planes, 1, 1), jnp.float32),
        "fc1_b": 0.1 * jax.random.normal(ks[8], (planes // 16,), jnp.float32),
        "fc2_w": 0.1 * jax.random.normal(ks[9], (planes, planes // 16, 1, 1), jnp.float32),
        "fc2_b": 0.1 * jax.random.normal(ks[10], (planes,), jnp.float32),
    }
    x = jax.random.normal(ks[11], (N, in_planes, H, W), jnp.float32)

    ref = jax.block_until_ready(reference_forward(x, params, stride))

    # Exact path: f32 MXU operands must match the XLA reference tightly.
    out_f32 = jax.block_until_ready(
        preact_block_forward(x, params, stride, compute_dtype=jnp.float32))
    assert out_f32.shape == (N, planes, H // stride, W // stride), out_f32.shape
    if not jnp.allclose(out_f32, ref, atol=2e-3, rtol=2e-3):
        raise AssertionError(
            "f32 mismatch vs reference, max abs diff "
            f"{float(jnp.max(jnp.abs(out_f32 - ref)))}")

    # Fast path: bf16 MXU operands / intermediates (looser tolerance because bf16
    # rounding compounds through two chained 3x3 convolutions).
    out_bf16 = jax.block_until_ready(
        preact_block_forward(x, params, stride, compute_dtype=jnp.bfloat16))
    if not jnp.allclose(out_bf16, ref, atol=5e-2, rtol=5e-2):
        raise AssertionError(
            "bf16 mismatch vs reference, max abs diff "
            f"{float(jnp.max(jnp.abs(out_bf16 - ref)))}")

    print("KERNEL_OK")
</pallas_src>

<mosaic_0001>
module attributes {stable_mosaic.version = 11 : i64} {
  func.func @_stats_kernel(%arg0: i32, %arg1: memref<1x256x16xf32, #tpu.memory_space<vmem>>, %arg2: memref<1x2x16xf32, #tpu.memory_space<vmem>>) attributes {dimension_semantics = [#tpu.dimension_semantics<parallel>], iteration_bounds = array<i64: 2>, scalar_prefetch = 0 : i64, scratch_operands = 0 : i64, tpu.core_type = #tpu.core_type<tc>, window_params = [{transform_indices = @transform_0, window_bounds = array<i64: 1, 256, 16>}, {transform_indices = @transform_1, window_bounds = array<i64: 1, 2, 16>}]} {
    %c0 = arith.constant 0 : index
    %c0_0 = arith.constant 0 : index
    %c0_1 = arith.constant 0 : index
    %0 = vector.load %arg1[%c0, %c0_0, %c0_1] : memref<1x256x16xf32, #tpu.memory_space<vmem>>, vector<1x256x16xf32>
    %1 = vector.shape_cast %0 : vector<1x256x16xf32> to vector<256x16xf32>
    %cst = arith.constant dense<0.000000e+00> : vector<16xf32>
    %2 = vector.multi_reduction <add>, %1, %cst [0] : vector<256x16xf32> to vector<16xf32>
    %3 = vector.shape_cast %2 : vector<16xf32> to vector<1x16xf32>
    %c0_2 = arith.constant 0 : index
    %c0_3 = arith.constant 0 : index
    %c0_4 = arith.constant 0 : index
    %4 = vector.load %arg2[%c0_2, %c0_3, %c0_4] : memref<1x2x16xf32, #tpu.memory_space<vmem>>, vector<1x1x16xf32>
    %5 = vector.shape_cast %4 : vector<1x1x16xf32> to vector<1x16xf32>
    %6 = vector.shape_cast %3 : vector<1x16xf32> to vector<1x1x16xf32>
    tpu.vector_store %arg2[%c0_2, %c0_3, %c0_4], %6 {strides = array<i32>} : memref<1x2x16xf32, #tpu.memory_space<vmem>>, vector<1x1x16xf32>,
    %7 = arith.mulf %1, %1 : vector<256x16xf32>
    %cst_5 = arith.constant dense<0.000000e+00> : vector<16xf32>
    %8 = vector.multi_reduction <add>, %7, %cst_5 [0] : vector<256x16xf32> to vector<16xf32>
    %9 = vector.shape_cast %8 : vector<16xf32> to vector<1x16xf32>
    %c0_6 = arith.constant 0 : index
    %c1 = arith.constant 1 : index
    %c0_7 = arith.constant 0 : index
    %10 = vector.load %arg2[%c0_6, %c1, %c0_7] : memref<1x2x16xf32, #tpu.memory_space<vmem>>, vector<1x1x16xf32>
    %11 = vector.shape_cast %10 : vector<1x1x16xf32> to vector<1x16xf32>
    %12 = vector.shape_cast %9 : vector<1x16xf32> to vector<1x1x16xf32>
    tpu.vector_store %arg2[%c0_6, %c1, %c0_7], %12 {strides = array<i32>} : memref<1x2x16xf32, #tpu.memory_space<vmem>>, vector<1x1x16xf32>,
    return
  }
  func.func @transform_0(%arg0: i32) -> (i32, i32, i32) {
    %c0_i32 = arith.constant 0 : i32
    %c0_i32_0 = arith.constant 0 : i32
    %c0_i32_1 = arith.constant 0 : i32
    return %arg0, %c0_i32, %c0_i32_0 : i32, i32, i32
  }
  func.func @transform_1(%arg0: i32) -> (i32, i32, i32) {
    %c0_i32 = arith.constant 0 : i32
    %c0_i32_0 = arith.constant 0 : i32
    %c0_i32_1 = arith.constant 0 : i32
    return %arg0, %c0_i32, %c0_i32_0 : i32, i32, i32
  }
}

</mosaic_0001>

<bundles_post_ra>
// kernel: tpu_custom_call.1
= control target key start
LH: loop header
LB: loop body
LE: loop exit
PB: predicated region body
PF: predicated region fallthrough
CT: control target
= control target key end

     0   :  { %6 = vsyncpa [#allocation3], 0  ;;  %s724_s0 = inlined_call_operand.vmem [shape: f32[2,256,16], index: 0, kind: input, shape index: {}]   ;;  %s725_s1 = inlined_call_operand.hbm [shape: f32[2,2,16], index: 1, kind: output, shape index: {}]  }
   0x1   :  { %8 = vsyncpa [#allocation3 + $0x1], 0  ;;  %s520_s6 = smov 0   ;;  %s522_s7 = smov 0  }
   0x2   :  { %s524_s8 = smov 0   ;;  %s526_s9 = smov 0  }
   0x3 LB: > { %s541_s10 = sadd.s32 4294967295, %s507_s9   ;;  %s394_s11 = sadd.s32 4294967294, %s507_s9   ;;  %s507_s9 = sphi %s526_s9, %s731_s9   ;;  %s503_s8 = sphi %s524_s8, %s730_s8   ;;  %s499_s7 = sphi %s522_s7, %s729_s7   ;;  %s495_s6 = sphi %s520_s6, %s728_s6  }
   0x4   : > { %s545_s12 = sadd.s32 1, %s507_s9   ;;  %s47_s13 = sadd.s32 1, %s503_s8 }
   0x5   : > { %s44_s14 = ssub.s32 %s507_s9, %s545_s12  ;;  %p57_p0 = scmp.ne.s32.totalorder %s503_s8, %s499_s7 }
   0x6   : > { %p45_p1 = scmp.eq.s32.totalorder %s44_s14, 0  ;;  %p58_p2 = scmp.eq.s32.totalorder %s541_s10, 1 }
   0x7   : > { %p63_p3 = scmp.ne.s32.totalorder %s499_s7, %s495_s6  ;;  %p64_p4 = scmp.eq.s32.totalorder %s394_s11, 1 }
   0x8   : > { %s556_s15 = scalar_select %p45_p1, %s503_s8, %s47_s13  }
   0x9   : > { %p558_p5 = por %p58_p2, %p57_p0  ;;  %p562_p6 = por %p64_p4, %p63_p3 }
   0xa   : > { %p397_p7 = scmp.ge.s32.totalorder %s507_s9, 1  ;;  %p90_p8 = scmp.lt.s32.totalorder %s507_s9, 3 }
   0xc   : > { %p91_p9 = pnand %p397_p7, %p90_p8 }
   0xd   : > { %p110_p10 = scmp.lt.s32.totalorder (!%p91_p9), %s541_s10, 1  ;;  %vm147_vm0 = vcmask (!%p91_p9), 130048   ;;  %s107_s23 = sand.u32 (!%p91_p9), 1, %s499_s7   ;;  %vm217_vm1 = vcmask (!%p91_p9), 122880  }
   0xe   : > { %94 = sbr.rel (%p91_p9) target bundleno = 120 (0x78), region = 24  ;;  %s398_s24 = sshll.u32 (!%p91_p9), %s107_s23, 1 }
   0xf   : > { %s109_s25 = scalar_lea.vmem (!%p91_p9), [#allocation2], %s398_s24  ;;  %s402_s26 = sshll.u32 (!%p91_p9), %s541_s10, 5 }
  0x10   : > { %s335_s27 = sshll.u32 (!%p91_p9), %s109_s25, 4  ;;  %s679_s30 = scalar_lea.hbm (!%p91_p9), %s725_s1, %s402_s26  ;;  %s681_s27 = int_to_ptr.vmem [resolvable:$true] %s335_s27 }
  0x11   : > { %s322_s2 = scalar_lea.sflag (!%p91_p9), [#allocation3], %s107_s23  ;;  %s445_s3 = scalar_lea.vmem (!%p91_p9), %s681_s27, 32 }
  0x12   : > { %p446_p11 = scmp.ne.s32.totalorder (!%p91_p9), %s681_s27, %s445_s3  ;;  %s509_s4 = smov (!%p91_p9), [#allocation2]  }
  0x13   : > { %s449_s5 = sshll.u32 (!%p91_p9), %s509_s4, 4  ;;  %s450_s5 = int_to_ptr.vmem [resolvable:$false] %s449_s5 }
  0x14   : > { %p447_p12 = pnand (!%p91_p9), %p446_p11, %p558_p5  ;;  %p452_p0 = scmp.lt.s32.totalorder (!%p91_p9), %s681_s27, %s450_s5 }
  0x15   : > { %s111_s18 = scalar_select %p110_p10, %s541_s10, 1 }
  0x16   : > { %p448_p13 = pneg %p447_p12  ;;  %s451_s10 = scalar_lea.vmem %s450_s5, 64 }
  0x17   : > { %s405_s19 = sshll.u32 %s111_s18, 8  ;;  %p453_p1 = scmp.lt.s32.totalorder %s451_s10, %s445_s3 }
  0x18   : > { %s573_s22 = scalar_lea.vmem %s724_s0, %s405_s19 }
  0x19   : > { %v115_v0 = vld [vmem:[%s573_s22] sm:$0xff]  ;;  %v116_v1 = vld [vmem:[%s573_s22 + $0x8] sm:$0xff]  ;;  %v117_v2 = vld [vmem:[%s573_s22 + $0x10] sm:$0xff]  ;;  %p454_p2 = por %p453_p1, %p452_p0 }
  0x1a   : > { %v148_v3 = vsel %vm147_vm0, %v115_v0, 0.0  ;;  %v149_v4 = vsel %vm147_vm0, %v116_v1, 0.0  ;;  %v151_v5 = vsel %vm147_vm0, %v117_v2, 0.0  ;;  %v118_v6 = vld [vmem:[%s573_s22 + $0x18] sm:$0xff]  ;;  %v119_v9 = vld [vmem:[%s573_s22 + $0x20] sm:$0xff]  ;;  %v120_v12 = vld [vmem:[%s573_s22 + $0x28] sm:$0xff]  ;;  %v219_v27 = vmul.f32 %v115_v0, %v115_v0 }
  0x1b   : > { %v150_v7 = vadd.f32 %v149_v4, %v148_v3  ;;  %v153_v8 = vsel %vm147_vm0, %v118_v6, 0.0  ;;  %v155_v11 = vsel %vm147_vm0, %v119_v9, 0.0  ;;  %v157_v14 = vsel %vm147_vm0, %v120_v12, 0.0  ;;  %v121_v15 = vld [vmem:[%s573_s22 + $0x30] sm:$0xff]  ;;  %v122_v18 = vld [vmem:[%s573_s22 + $0x38] sm:$0xff]  ;;  %v123_v21 = vld [vmem:[%s573_s22 + $0x40] sm:$0xff]  ;;  %p455_p3 = pnand %p454_p2, %p448_p13 }
  0x1c   : > { %v159_v17 = vsel %vm147_vm0, %v121_v15, 0.0  ;;  %v161_v20 = vsel %vm147_vm0, %v122_v18, 0.0  ;;  %v163_v23 = vsel %vm147_vm0, %v123_v21, 0.0  ;;  %v124_v24 = vld [vmem:[%s573_s22 + $0x48] sm:$0xff]  ;;  %v220_v28 = vmul.f32 %v116_v1, %v116_v1  ;;  %v125_v30 = vld [vmem:[%s573_s22 + $0x50] sm:$0xff]  ;;  %v126_v32 = vld [vmem:[%s573_s22 + $0x58] sm:$0xff] }
  0x1d   : > { %v152_v10 = vadd.f32 %v151_v5, %v150_v7  ;;  %v165_v26 = vsel %vm147_vm0, %v124_v24, 0.0  ;;  %v221_v29 = vmul.f32 %v117_v2, %v117_v2  ;;  %v167_v33 = vsel %vm147_vm0, %v125_v30, 0.0  ;;  %v127_v41 = vld [vmem:[%s573_s22 + $0x60] sm:$0xff]  ;;  %v128_v47 = vld [vmem:[%s573_s22 + $0x68] sm:$0xff]  ;;  %v129_v53 = vld [vmem:[%s573_s22 + $0x70] sm:$0xff] }
  0x1e   : > { %v222_v34 = vmul.f32 %v118_v6, %v118_v6  ;;  %v169_v36 = vsel %vm147_vm0, %v126_v32, 0.0  ;;  %v223_v37 = vmul.f32 %v119_v9, %v119_v9  ;;  %v251_v38 = vsel %vm147_vm0, %v219_v27, 0.0  ;;  %v130_v59 = vld [vmem:[%s573_s22 + $0x78] sm:$0xff]  ;;  %v131_v1 = vld [vmem:[%s573_s22 + $0x80] sm:$0xff]  ;;  %v132_v7 = vld [vmem:[%s573_s22 + $0x88] sm:$0xff] }
  0x1f   : > { %v154_v13 = vadd.f32 %v153_v8, %v152_v10  ;;  %v252_v39 = vsel %vm147_vm0, %v220_v28, 0.0  ;;  %v254_v40 = vsel %vm147_vm0, %v221_v29, 0.0  ;;  %v171_v44 = vsel %vm147_vm0, %v127_v41, 0.0 }
  0x20   : > { %v253_v43 = vadd.f32 %v252_v39, %v251_v38  ;;  %v224_v45 = vmul.f32 %v120_v12, %v120_v12  ;;  %v256_v46 = vsel %vm147_vm0, %v222_v34, 0.0  ;;  %v173_v50 = vsel %vm147_vm0, %v128_v47, 0.0 }
  0x21   : > { %v156_v16 = vadd.f32 %v155_v11, %v154_v13  ;;  %v225_v51 = vmul.f32 %v121_v15, %v121_v15  ;;  %v258_v52 = vsel %vm147_vm0, %v223_v37, 0.0  ;;  %v175_v56 = vsel %vm147_vm0, %v129_v53, 0.0  ;;  %v133_v13 = vld [vmem:[%s573_s22 + $0x90] sm:$0xff] }
  0x22   : > { %v255_v49 = vadd.f32 %v254_v40, %v253_v43  ;;  %v226_v57 = vmul.f32 %v122_v18, %v122_v18  ;;  %v260_v58 = vsel %vm147_vm0, %v224_v45, 0.0  ;;  %v177_v62 = vsel %vm147_vm0, %v130_v59, 0.0  ;;  %v137_v37 = vld [vmem:[%s573_s22 + $0xb0] sm:$0xff]  ;;  %v138_v43 = vld [vmem:[%s573_s22 + $0xb8] sm:$0xff] }
  0x23   : > { %v158_v19 = vadd.f32 %v157_v14, %v156_v16  ;;  %v227_v63 = vmul.f32 %v123_v21, %v123_v21  ;;  %v262_v0 = vsel %vm147_vm0, %v225_v51, 0.0  ;;  %v179_v4 = vsel %vm147_vm0, %v131_v1, 0.0 }
  0x24   : > { %v257_v55 = vadd.f32 %v256_v46, %v255_v49  ;;  %v228_v5 = vmul.f32 %v124_v24, %v124_v24  ;;  %v264_v6 = vsel %vm147_vm0, %v226_v57, 0.0  ;;  %v181_v10 = vsel %vm147_vm0, %v132_v7, 0.0  ;;  %v139_v49 = vld [vmem:[%s573_s22 + $0xc0] sm:$0xff] }
  0x25   : > { %v160_v22 = vadd.f32 %v159_v17, %v158_v19  ;;  %v229_v11 = vmul.f32 %v125_v30, %v125_v30  ;;  %v266_v12 = vsel %vm147_vm0, %v227_v63, 0.0  ;;  %v183_v16 = vsel %vm147_vm0, %v133_v13, 0.0  ;;  %v134_v19 = vld [vmem:[%s573_s22 + $0x98] sm:$0xff] }
  0x26   : > { %v259_v61 = vadd.f32 %v258_v52, %v257_v55  ;;  %v230_v17 = vmul.f32 %v126_v32, %v126_v32  ;;  %v268_v18 = vsel %vm147_vm0, %v228_v5, 0.0  ;;  %v232_v29 = vmul.f32 %v128_v47, %v128_v47  ;;  %v140_v55 = vld [vmem:[%s573_s22 + $0xc8] sm:$0xff] }
  0x27   : > { %v162_v25 = vadd.f32 %v161_v20, %v160_v22  ;;  %v185_v22 = vsel %vm147_vm0, %v134_v19, 0.0  ;;  %v270_v24 = vsel %vm147_vm0, %v229_v11, 0.0  ;;  %v191_v40 = vsel %vm147_vm0, %v137_v37, 0.0 }
  0x28   : > { %v261_v3 = vadd.f32 %v260_v58, %v259_v61  ;;  %v272_v30 = vsel %vm147_vm0, %v230_v17, 0.0  ;;  %v193_v46 = vsel %vm147_vm0, %v138_v43, 0.0  ;;  %v235_v47 = vmul.f32 %v131_v1, %v131_v1  ;;  %v141_v61 = vld [vmem:[%s573_s22 + $0xd0] sm:$0xff] }
  0x29   : > { %v164_v31 = vadd.f32 %v163_v23, %v162_v25  ;;  %v231_v23 = vmul.f32 %v127_v41, %v127_v41  ;;  %v135_v25 = vld [vmem:[%s573_s22 + $0xa0] sm:$0xff]  ;;  %v234_v41 = vmul.f32 %v130_v59, %v130_v59  ;;  %v195_v52 = vsel %vm147_vm0, %v139_v49, 0.0 }
  0x2a   : > { %v263_v9 = vadd.f32 %v262_v0, %v261_v3  ;;  %v187_v28 = vsel %vm147_vm0, %v135_v25, 0.0  ;;  %v197_v58 = vsel %vm147_vm0, %v140_v55, 0.0  ;;  %v237_v59 = vmul.f32 %v133_v13, %v133_v13  ;;  %v142_v3 = vld [vmem:[%s573_s22 + $0xd8] sm:$0xff] }
  0x2b   : > { %v166_v35 = vadd.f32 %v165_v26, %v164_v31  ;;  %v136_v31 = vld [vmem:[%s573_s22 + $0xa8] sm:$0xff]  ;;  %v199_v0 = vsel %vm147_vm0, %v141_v61, 0.0  ;;  %v238_v1 = vmul.f32 %v134_v19, %v134_v19  ;;  %v241_v19 = vmul.f32 %v137_v37, %v137_v37 }
  0x2c   : > { %v265_v15 = vadd.f32 %v264_v6, %v263_v9  ;;  %v189_v34 = vsel %vm147_vm0, %v136_v31, 0.0  ;;  %v201_v6 = vsel %vm147_vm0, %v142_v3, 0.0  ;;  %v143_v9 = vld [vmem:[%s573_s22 + $0xe0] sm:$0xff]  ;;  %v240_v13 = vmul.f32 %v136_v31, %v136_v31 }
  0x2d   : > { %v168_v42 = vadd.f32 %v167_v33, %v166_v35  ;;  %v233_v35 = vmul.f32 %v129_v53, %v129_v53  ;;  %v236_v53 = vmul.f32 %v132_v7, %v132_v7  ;;  %v239_v7 = vmul.f32 %v135_v25, %v135_v25 }
  0x2e   : > { %v267_v21 = vadd.f32 %v266_v12, %v265_v15  ;;  %v203_v12 = vsel %vm147_vm0, %v143_v9, 0.0  ;;  %v144_v15 = vld [vmem:[%s573_s22 + $0xe8] sm:$0xff]  ;;  %v242_v25 = vmul.f32 %v138_v43, %v138_v43  ;;  %v243_v31 = vmul.f32 %v139_v49, %v139_v49 }
  0x2f   : > { %v170_v48 = vadd.f32 %v169_v36, %v168_v42  ;;  %v274_v36 = vsel %vm147_vm0, %v231_v23, 0.0  ;;  %v276_v42 = vsel %vm147_vm0, %v232_v29, 0.0  ;;  %v246_v43 = vmul.f32 %v142_v3, %v142_v3 }
  0x30   : > { %v269_v27 = vadd.f32 %v268_v18, %v267_v21  ;;  %v205_v18 = vsel %vm147_vm0, %v144_v15, 0.0  ;;  %v145_v21 = vld [vmem:[%s573_s22 + $0xf0] sm:$0xff] }
  0x31   : > { %v172_v54 = vadd.f32 %v171_v44, %v170_v48  ;;  %v278_v48 = vsel %vm147_vm0, %v233_v35, 0.0  ;;  %v244_v35 = vmul.f32 %v140_v55, %v140_v55  ;;  %v249_v55 = vmul.f32 %v145_v21, %v145_v21 }
  0x32   : > { %v271_v33 = vadd.f32 %v270_v24, %v269_v27  ;;  %v207_v24 = vsel %vm147_vm0, %v145_v21, 0.0  ;;  %v146_v27 = vld [vmem:[%s573_s22 + $0xf8] sm:$0xff] }
  0x33   : > { %v174_v60 = vadd.f32 %v173_v50, %v172_v54  ;;  %v280_v54 = vsel %vm147_vm0, %v234_v41, 0.0 }
  0x34   : > { %v273_v39 = vadd.f32 %v272_v30, %v271_v33  ;;  %v209_v30 = vsel %vm147_vm0, %v146_v27, 0.0 }
  0x35   : > { %v176_v2 = vadd.f32 %v175_v56, %v174_v60  ;;  %v282_v60 = vsel %vm147_vm0, %v235_v47, 0.0  ;;  %v247_v47 = vmul.f32 %v143_v9, %v143_v9 }
  0x36   : > { %v275_v45 = vadd.f32 %v274_v36, %v273_v39  ;;  %v296_v36 = vsel %vm147_vm0, %v242_v25, 0.0  ;;  %v245_v39 = vmul.f32 %v141_v61, %v141_v61 }
  0x37   : > { %v178_v8 = vadd.f32 %v177_v62, %v176_v2  ;;  %v284_v2 = vsel %vm147_vm0, %v236_v53, 0.0 }
  0x38   : > { %v277_v51 = vadd.f32 %v276_v42, %v275_v45 }
  0x39   : > { %v180_v14 = vadd.f32 %v179_v4, %v178_v8  ;;  %v286_v8 = vsel %vm147_vm0, %v237_v59, 0.0  ;;  %v250_v59 = vmul.f32 %v146_v27, %v146_v27 }
  0x3a   : > { %v279_v57 = vadd.f32 %v278_v48, %v277_v51  ;;  %v302_v48 = vsel %vm147_vm0, %v245_v39, 0.0  ;;  %v248_v51 = vmul.f32 %v144_v15, %v144_v15 }
  0x3b   : > { %v182_v20 = vadd.f32 %v181_v10, %v180_v14  ;;  %v288_v14 = vsel %vm147_vm0, %v238_v1, 0.0  ;;  %v312_v1 = vsel %vm147_vm0, %v250_v59, 0.0 }
  0x3c   : > { %v281_v63 = vadd.f32 %v280_v54, %v279_v57 }
  0x3d   : > { %v184_v26 = vadd.f32 %v183_v16, %v182_v20  ;;  %v290_v20 = vsel %vm147_vm0, %v239_v7, 0.0 }
  0x3e   : > { %v283_v5 = vadd.f32 %v282_v60, %v281_v63  ;;  %v308_v60 = vsel %vm147_vm0, %v248_v51, 0.0  ;;  %v310_v63 = vsel %vm147_vm0, %v249_v55, 0.0 }
  0x3f   : > { %v186_v32 = vadd.f32 %v185_v22, %v184_v26  ;;  %v292_v26 = vsel %vm147_vm0, %v240_v13, 0.0 }
  0x40   : > { %v285_v11 = vadd.f32 %v284_v2, %v283_v5 }
  0x41   : > { %v188_v38 = vadd.f32 %v187_v28, %v186_v32  ;;  %v294_v32 = vsel %vm147_vm0, %v241_v19, 0.0 }
  0x42   : > { %v287_v17 = vadd.f32 %v286_v8, %v285_v11 }
  0x43   : > { %v190_v44 = vadd.f32 %v189_v34, %v188_v38 }
  0x44   : > { %v289_v23 = vadd.f32 %v288_v14, %v287_v17 }
  0x45   : > { %v192_v50 = vadd.f32 %v191_v40, %v190_v44  ;;  %v298_v40 = vsel %vm147_vm0, %v243_v31, 0.0  ;;  %v300_v44 = vsel %vm147_vm0, %v244_v35, 0.0 }
  0x46   : > { %v291_v29 = vadd.f32 %v290_v20, %v289_v23 }
  0x47   : > { %v194_v56 = vadd.f32 %v193_v46, %v192_v50 }
  0x48   : > { %v293_v34 = vadd.f32 %v292_v26, %v291_v29 }
  0x49   : > { %v196_v62 = vadd.f32 %v195_v52, %v194_v56  ;;  %v304_v52 = vsel %vm147_vm0, %v246_v43, 0.0  ;;  %v306_v56 = vsel %vm147_vm0, %v247_v47, 0.0 }
  0x4a   : > { %v295_v38 = vadd.f32 %v294_v32, %v293_v34 }
  0x4b   : > { %v198_v4 = vadd.f32 %v197_v58, %v196_v62 }
  0x4c   : > { %v297_v42 = vadd.f32 %v296_v36, %v295_v38 }
  0x4d   : > { %v200_v10 = vadd.f32 %v199_v0, %v198_v4 }
  0x4e   : > { %v299_v46 = vadd.f32 %v298_v40, %v297_v42 }
  0x4f   : > { %v202_v16 = vadd.f32 %v201_v6, %v200_v10 }
  0x50   : > { %v301_v50 = vadd.f32 %v300_v44, %v299_v46 }
  0x51   : > { %v204_v22 = vadd.f32 %v203_v12, %v202_v16 }
  0x52   : > { %v303_v54 = vadd.f32 %v302_v48, %v301_v50 }
  0x53   : > { %v206_v28 = vadd.f32 %v205_v18, %v204_v22 }
  0x54   : > { %v305_v58 = vadd.f32 %v304_v52, %v303_v54 }
  0x55   : > { %v208_v33 = vadd.f32 %v207_v24, %v206_v28 }
  0x56   : > { %v307_v62 = vadd.f32 %v306_v56, %v305_v58 }
  0x57   : > { %v210_v37 = vadd.f32 %v209_v30, %v208_v33 }
  0x58   : > { %v309_v0 = vadd.f32 %v308_v60, %v307_v62 }
  0x59   : > { %v211_v41 = vrot.slane %v210_v37, 4 }
  0x5a   : > { %v311_v2 = vadd.f32 %v310_v63, %v309_v0 }
  0x5b   : > { %v212_v45 = vadd.f32 %v211_v41, %v210_v37 }
  0x5c   : > { %v313_v3 = vadd.f32 %v312_v1, %v311_v2 }
  0x5d   : > { %v213_v49 = vrot.slane %v212_v45, 2 }
  0x5e   : > { %v314_v4 = vrot.slane %v313_v3, 4 }
  0x5f   : > { %v214_v53 = vadd.f32 %v213_v49, %v212_v45 }
  0x60   : > { %v315_v5 = vadd.f32 %v314_v4, %v313_v3 }
  0x61   : > { %v215_v57 = vrot.slane %v214_v53, 1 }
  0x62   : > { %v316_v6 = vrot.slane %v315_v5, 2 }
  0x63   : > { %v216_v61 = vadd.f32 %v215_v57, %v214_v53 }
  0x64   : > { %v317_v7 = vadd.f32 %v316_v6, %v315_v5 }
  0x65   : > { %218 = vst.msk [vmem:[%s109_s25] sm:$0x1] %vm217_vm1, %v216_v61 }
  0x66   : > { %v318_v8 = vrot.slane %v317_v7, 1 }
  0x68   : > { %v319_v9 = vadd.f32 %v318_v8, %v317_v7 }
  0x6a   : > { %320 = vst.msk [vmem:[%s109_s25 + $0x1] sm:$0x1] %vm217_vm1, %v319_v9 }
  0x6b   : > { %458 = shalt.err (!%p455_p3)
}
  0x6c   : > { %s459_s11 = scalar_lea.hbm %s679_s30, 32  ;;  %s463_s18 = scalar_lea.hbm %s725_s1, 64 }
  0x6d   : > { %p460_p4 = scmp.ne.s32.totalorder %s679_s30, %s459_s11  ;;  %p464_p9 = scmp.lt.u32.totalorder %s679_s30, %s725_s1 }
  0x6e   : > { %p465_p10 = scmp.lt.u32.totalorder %s463_s18, %s459_s11  ;;  %p467_p12 = scmp.lt.u32.totalorder %s459_s11, %s679_s30 }
  0x6f   : > { %p461_p7 = pnand %p460_p4, %p558_p5 }
  0x70   : > { %p466_p11 = por %p465_p10, %p464_p9 }
  0x71   : > { %p462_p8 = pneg %p461_p7 }
  0x72   : > { %p468_p13 = por %p467_p12, %p466_p11 }
  0x74   : > { %p469_p0 = pnand %p468_p13, %p462_p8 }
  0x76   : > { %472 = shalt.err (!%p469_p0)
}
  0x77   : > { %406 = dma.vmem_to_hbm [thread:$0]  (%p558_p5), %s681_s27, 32, %s679_s30, %s322_s2  }
  0x78 PF: > { %p412_p1 = scmp.ge.s32.totalorder %s507_s9, 2  ;;  %s347_s21 = sand.u32 1, %s495_s6  }
  0x79   : > { %s348_s22 = scalar_lea.sflag [#allocation3], %s347_s21 }
  0x7a   : > { %p409_p2 = pnand %p412_p1, %p562_p6 }
  0x7c   : > { %490 = dma.done.wait (!%p409_p2), %s348_s22, 32  }
  0x7d   : > { %492 = vsyncadd (!%p409_p2), %s348_s22, 4294967264  ;;  %p11_p3 = scmp.ge.s32.totalorder %s545_s12, 4   ;;  %s728_s6 = smov %s499_s7 }
  0x7e   : > { %s729_s7 = smov %s503_s8  ;;  %s730_s8 = smov %s556_s15 }
  0x7f   : > { %s731_s9 = smov %s545_s12  ;;  %13 = sbr.rel (!%p11_p3) target bundleno = 3 (0x3), region = 59 }
  0x86   :  { %353 = vsyncpa [#allocation3], 1 }
  0x87   :  { %355 = vsyncpa [#allocation3 + $0x1], 1 }

</bundles_post_ra>
